<compile_context>
chip_gen: v6e
topology: v6e:2x2x1
jax: 0.10.0
libtpu: 0.0.40
codegen_flags: <defaults>
</compile_context>

<pallas_src>
import math

import jax
import jax.numpy as jnp
from jax.experimental import pallas as pl
from jax.experimental.pallas import tpu as pltpu


def _round_up(x, m):
    return ((x + m - 1) // m) * m


def _pack_factor(in_dim, out_dim, target_lanes=256, max_weight_bytes=2 << 20):
    """Rows packed per lane-group so both packed feature widths are multiples of 128."""
    need_in = 128 // math.gcd(128, in_dim)
    need_out = 128 // math.gcd(128, out_dim)
    k = need_in * need_out // math.gcd(need_in, need_out)  # lcm
    # Widen toward ~256 lanes (native v6e/v7x MXU tile) while the weight stays tiny.
    while k * max(in_dim, out_dim) * 2 <= target_lanes:
        k *= 2
    # If the block-diagonal weight would be too big, fall back to no packing.
    if (k * in_dim) * (k * out_dim) * 4 > max_weight_bytes:
        return 1
    return k


def _fused_mlp_kernel(x_ref, w_ref, b_ref, o_ref):
    # Single affine map + tanh.  W/b are the exact algebraic fold of
    # fc1 -> fc2 -> fc3 (no nonlinearity between them in the reference),
    # lane-packed into a block-diagonal form in the wrapper.
    y = jnp.dot(x_ref[...], w_ref[...], preferred_element_type=jnp.float32)
    o_ref[...] = jnp.tanh(y + b_ref[...]).astype(o_ref.dtype)


def mlp_forward(t, x, params, *, block_batch=32768):
    """Forward pass of MLP: tanh(fc3(fc2(fc1(x)))).  `t` is ignored."""
    del t  # unused, matching the PyTorch forward signature

    w1, b1 = params["w1"], params["b1"]
    w2, b2 = params["w2"], params["b2"]
    w3, b3 = params["w3"], params["b3"]

    # Fold the three linears into one affine map (tiny, amortized under jit).
    w_fused = (w1 @ w2) @ w3                     # (in_dim, out_dim)
    b_fused = (b1 @ w2 + b2) @ w3 + b3           # (out_dim,)

    batch, in_dim = x.shape
    out_dim = w_fused.shape[1]

    # Lane-pack k original rows into one packed row (exact block-diagonal math).
    k = _pack_factor(in_dim, out_dim)
    w_block = jnp.kron(jnp.eye(k, dtype=w_fused.dtype), w_fused)  # (k*in, k*out)
    b_block = jnp.tile(b_fused, k)[None, :]                       # (1, k*out)

    # Pad only to a multiple of the pack factor (required by the reshape).
    padded_batch = _round_up(batch, k)
    if padded_batch != batch:
        x = jnp.pad(x, ((0, padded_batch - batch), (0, 0)))
    packed_rows = padded_batch // k
    xp = x.reshape(packed_rows, k * in_dim)   # free row-major reshape (no copy)

    # Packed-row tile: multiple of 8 (sublane) or the full extent.
    wanted = max(8, (max(block_batch, k) // k) // 8 * 8)
    if wanted >= packed_rows:
        tbp = packed_rows
        grid = (1,)
    else:
        tbp = wanted
        grid = (pl.cdiv(packed_rows, tbp),)   # Pallas masks the partial tail block

    itemsize = jnp.dtype(x.dtype).itemsize
    cost = pl.CostEstimate(
        flops=2 * packed_rows * (k * in_dim) * (k * out_dim)
        + packed_rows * k * out_dim,
        transcendentals=packed_rows * k * out_dim,
        bytes_accessed=packed_rows * k * (in_dim + out_dim) * itemsize
        + (k * in_dim * k * out_dim + k * out_dim) * 4,
    )

    out_packed = pl.pallas_call(
        _fused_mlp_kernel,
        out_shape=jax.ShapeDtypeStruct((packed_rows, k * out_dim), x.dtype),
        grid=grid,
        in_specs=[
            pl.BlockSpec((tbp, k * in_dim), lambda i: (i, 0)),          # x (streamed)
            pl.BlockSpec((k * in_dim, k * out_dim), lambda i: (0, 0)),  # W (resident)
            pl.BlockSpec((1, k * out_dim), lambda i: (0, 0)),           # b (resident)
        ],
        out_specs=pl.BlockSpec((tbp, k * out_dim), lambda i: (i, 0)),
        compiler_params=pltpu.CompilerParams(
            # v7x megacore shards the batch-tile axis across both TCs; harmless
            # on single-TC v5e/v6e.
            dimension_semantics=("parallel",),
        ),
        cost_estimate=cost,
    )(xp, w_block, b_block)

    out = out_packed.reshape(padded_batch, out_dim)   # free reshape back
    if padded_batch != batch:
        out = out[:batch]
    return out


def init_params(key, input_dim, hidden_dim, output_dim):
    """Deterministic synthetic init (PyTorch-Linear-style uniform bounds)."""

    def linear(k, fan_in, fan_out):
        kw, kb = jax.random.split(k)
        bound = 1.0 / jnp.sqrt(fan_in)
        # stored as (in, out) so the kernel does x @ W
        w = jax.random.uniform(kw, (fan_in, fan_out), jnp.float32, -bound, bound)
        b = jax.random.uniform(kb, (fan_out,), jnp.float32, -bound, bound)
        return w, b

    k1, k2, k3 = jax.random.split(key, 3)
    w1, b1 = linear(k1, input_dim, hidden_dim)
    w2, b2 = linear(k2, hidden_dim, hidden_dim)
    w3, b3 = linear(k3, hidden_dim, output_dim)
    return {"w1": w1, "b1": b1, "w2": w2, "b2": b2, "w3": w3, "b3": b3}


def _reference(x, params):
    h = x @ params["w1"] + params["b1"]
    h = h @ params["w2"] + params["b2"]
    return jnp.tanh(h @ params["w3"] + params["b3"])


if __name__ == "__main__":
    input_dim, hidden_dim, output_dim = 16, 32, 16
    batch = 8

    key = jax.random.PRNGKey(0)
    kp, kx, kx2 = jax.random.split(key, 3)
    params = init_params(kp, input_dim, hidden_dim, output_dim)
    x = jax.random.normal(kx, (batch, input_dim), jnp.float32)
    t = jnp.zeros((), jnp.float32)  # ignored by forward, matches PyTorch signature

    fwd = jax.jit(mlp_forward, static_argnames=("block_batch",))

    # small-batch check (single packed tile)
    out = jax.block_until_ready(fwd(t, x, params))
    ref = _reference(x, params)
    assert out.shape == (batch, output_dim)
    assert jnp.allclose(out, ref, atol=2e-5, rtol=1e-5), float(
        jnp.max(jnp.abs(out - ref))
    )

    # ragged-batch check: exercises the multi-step grid + masked tail block
    batch2 = 300
    x2 = jax.random.normal(kx2, (batch2, input_dim), jnp.float32)
    out2 = jax.block_until_ready(fwd(t, x2, params, block_batch=128))
    ref2 = _reference(x2, params)
    assert out2.shape == (batch2, output_dim)
    assert jnp.allclose(out2, ref2, atol=2e-5, rtol=1e-5), float(
        jnp.max(jnp.abs(out2 - ref2))
    )

    print("KERNEL_OK")
</pallas_src>

<mosaic_0001>
module attributes {stable_mosaic.version = 11 : i64} {
  func.func @_fused_mlp_kernel(%arg0: i32, %arg1: memref<1x256xf32, #tpu.memory_space<vmem>>, %arg2: memref<256x256xf32, #tpu.memory_space<vmem>>, %arg3: memref<1x256xf32, #tpu.memory_space<vmem>>, %arg4: memref<1x256xf32, #tpu.memory_space<vmem>>) attributes {dimension_semantics = [#tpu.dimension_semantics<parallel>], iteration_bounds = array<i64: 1>, scalar_prefetch = 0 : i64, scratch_operands = 0 : i64, tpu.core_type = #tpu.core_type<tc>, window_params = [{transform_indices = @transform_0, window_bounds = array<i64: 1, 256>}, {pipeline_mode = #tpu.pipeline_mode<synchronous>, transform_indices = @transform_1, window_bounds = array<i64: 256, 256>}, {pipeline_mode = #tpu.pipeline_mode<synchronous>, transform_indices = @transform_2, window_bounds = array<i64: 1, 256>}, {transform_indices = @transform_3, window_bounds = array<i64: 1, 256>}]} {
    %c0 = arith.constant 0 : index
    %c0_0 = arith.constant 0 : index
    %0 = vector.load %arg1[%c0, %c0_0] : memref<1x256xf32, #tpu.memory_space<vmem>>, vector<1x256xf32>
    %c0_1 = arith.constant 0 : index
    %c0_2 = arith.constant 0 : index
    %1 = vector.load %arg2[%c0_1, %c0_2] : memref<256x256xf32, #tpu.memory_space<vmem>>, vector<256x256xf32>
    %cst = arith.constant dense<0.000000e+00> : vector<1x256xf32>
    %2 = tpu.matmul %0, %1, %cst {dimension_numbers = #tpu.dot_dimension_numbers<[1], [0], [0], [1], [0, 0, 1, 1], [], []>} : vector<1x256xf32>, vector<256x256xf32>, vector<1x256xf32> -> vector<1x256xf32>
    %c0_3 = arith.constant 0 : index
    %c0_4 = arith.constant 0 : index
    %3 = vector.load %arg3[%c0_3, %c0_4] : memref<1x256xf32, #tpu.memory_space<vmem>>, vector<1x256xf32>
    %4 = arith.addf %2, %3 : vector<1x256xf32>
    %5 = math.tanh %4 : vector<1x256xf32>
    %c0_5 = arith.constant 0 : index
    %c0_6 = arith.constant 0 : index
    %6 = vector.load %arg4[%c0_5, %c0_6] : memref<1x256xf32, #tpu.memory_space<vmem>>, vector<1x256xf32>
    tpu.vector_store %arg4[%c0_5, %c0_6], %5 {strides = array<i32>} : memref<1x256xf32, #tpu.memory_space<vmem>>, vector<1x256xf32>,
    return
  }
  func.func @transform_0(%arg0: i32) -> (i32, i32) {
    %c0_i32 = arith.constant 0 : i32
    %c0_i32_0 = arith.constant 0 : i32
    return %arg0, %c0_i32 : i32, i32
  }
  func.func @transform_1(%arg0: i32) -> (i32, i32) {
    %c0_i32 = arith.constant 0 : i32
    %c0_i32_0 = arith.constant 0 : i32
    %c0_i32_1 = arith.constant 0 : i32
    return %c0_i32, %c0_i32_0 : i32, i32
  }
  func.func @transform_2(%arg0: i32) -> (i32, i32) {
    %c0_i32 = arith.constant 0 : i32
    %c0_i32_0 = arith.constant 0 : i32
    %c0_i32_1 = arith.constant 0 : i32
    return %c0_i32, %c0_i32_0 : i32, i32
  }
  func.func @transform_3(%arg0: i32) -> (i32, i32) {
    %c0_i32 = arith.constant 0 : i32
    %c0_i32_0 = arith.constant 0 : i32
    return %arg0, %c0_i32 : i32, i32
  }
}

</mosaic_0001>

<bundles_post_ra>
// kernel: tile.8
= control target key start
LH: loop header
LB: loop body
LE: loop exit
PB: predicated region body
PF: predicated region fallthrough
CT: control target
= control target key end

     0   :  { %s28_s0 = inlined_call_operand.vmem [shape: f32[16], index: 0, kind: input, shape index: {}]   ;;  %s29_s1 = inlined_call_operand.vmem [shape: f32[16,16], index: 1, kind: output, shape index: {}]  }
   0x1   :  { %v4_v0 = vld [vmem:[%s28_s0] ss:$0 sm:$0xff] }
   0x2   :  { %5 = vst [vmem:[%s29_s1] sm:$0xff] %v4_v0  ;;  %8 = vst [vmem:[%s29_s1 + $0x8] sm:$0xff] %v4_v0 }

// kernel: tile.9
= control target key start
LH: loop header
LB: loop body
LE: loop exit
PB: predicated region body
PF: predicated region fallthrough
CT: control target
= control target key end

     0   :  { %s7_s6 = smov 3  ;;  %s21_s9 = smov 3  ;;  %vm4_vm0 = vcmask 130048   ;;  %vm11_vm1 = vcmask 1048448   ;;  %vm18_vm2 = vcmask 917248   ;;  %vm25_vm3 = vcmask 786048   ;;  %s131_s0 = inlined_call_operand.vmem [shape: f32[16,16], index: 0, kind: input, shape index: {}]   ;;  %s132_s1 = inlined_call_operand.vmem [shape: f32[1,256], index: 1, kind: output, shape index: {}]  }
   0x1   :  { %v69_v0 = vld [vmem:[%s131_s0 + $0x7] ss:$8 sm:%s7_s6]   ;;  %s84_s10 = smov 112   ;;  %v71_v1 = vld [vmem:[%s131_s0 + $0x5] ss:$8 sm:%s21_s9]   ;;  %s14_s13 = smov 3 }
   0x2   :  { %9 = vrot.lane.b32.xlu0 %v69_v0, %s84_s10  ;;  %s85_s14 = smov 80   ;;  %v70_v2 = vld [vmem:[%s131_s0 + $0x6] ss:$8 sm:%s14_s13]   ;;  %s28_s17 = smov 3  ;;  %vm32_vm4 = vcmask 654848   ;;  %vm39_vm5 = vcmask 523648  }
   0x3   :  { %23 = vrot.lane.b32.xlu1 %v71_v1, %s85_s14  ;;  %v72_v3 = vld [vmem:[%s131_s0 + $0x4] ss:$8 sm:%s28_s17]   ;;  %s35_s20 = smov 3  ;;  %s42_s21 = smov 3  ;;  %vm46_vm6 = vcmask 392448   ;;  %vm53_vm7 = vcmask 261248  }
   0x4   :  { %s86_s22 = smov 96   ;;  %s87_s23 = smov 64   ;;  %v73_v4 = vld [vmem:[%s131_s0 + $0x3] ss:$8 sm:%s35_s20]   ;;  %v74_v5 = vld [vmem:[%s131_s0 + $0x2] ss:$8 sm:%s42_s21]  }
   0x5   :  { %s2_s26 = smov 3  ;;  %s49_s29 = smov 3 }
   0x6   :  { %16 = vrot.lane.b32.xlu0 %v70_v2, %s86_s22  ;;  %v3_v6 = vld [vmem:[%s131_s0] ss:$8 sm:%s2_s26]   ;;  %s88_s3 = smov 48   ;;  %s89_s4 = smov 32  }
   0x7   :  { %30 = vrot.lane.b32.xlu1 %v72_v3, %s87_s23  ;;  %5 = vst.msk [vmem:[#allocation0] ss:$8 sm:$0x3] %vm4_vm0, %v3_v6   ;;  %v75_v7 = vld [vmem:[%s131_s0 + $0x1] ss:$8 sm:%s49_s29]   ;;  %s90_s0 = smov 16  }
   0xa   :  { %37 = vrot.lane.b32.xlu0 %v73_v4, %s88_s3 }
   0xb   :  { %44 = vrot.lane.b32.xlu1 %v74_v5, %s89_s4 }
   0xe   :  { %51 = vrot.lane.b32.xlu0 %v75_v7, %s90_s0 }
  0x74   :  { %v10_v8 = vpop.permute.xlu0 %9  }
  0x75   :  { %12 = vst.msk [vmem:[#allocation0] ss:$8 sm:$0x3] %vm11_vm1, %v10_v8   ;;  %v24_v9 = vpop.permute.xlu1 %23  }
  0x78   :  { %v17_v10 = vpop.permute.xlu0 %16  }
  0x79   :  { %19 = vst.msk [vmem:[#allocation0] ss:$8 sm:$0x3] %vm18_vm2, %v17_v10   ;;  %v31_v11 = vpop.permute.xlu1 %30  }
  0x7a   :  { %26 = vst.msk [vmem:[#allocation0] ss:$8 sm:$0x3] %vm25_vm3, %v24_v9  }
  0x7b   :  { %33 = vst.msk [vmem:[#allocation0] ss:$8 sm:$0x3] %vm32_vm4, %v31_v11  }
  0x7c   :  { %v38_v12 = vpop.permute.xlu0 %37  }
  0x7d   :  { %40 = vst.msk [vmem:[#allocation0] ss:$8 sm:$0x3] %vm39_vm5, %v38_v12   ;;  %v45_v13 = vpop.permute.xlu1 %44  }
  0x7e   :  { %47 = vst.msk [vmem:[#allocation0] ss:$8 sm:$0x3] %vm46_vm6, %v45_v13  }
  0x80   :  { %v52_v14 = vpop.permute.xlu0 %51  }
  0x81   :  { %54 = vst.msk [vmem:[#allocation0] ss:$8 sm:$0x3] %vm53_vm7, %v52_v14  }
  0x88   :  { %v59_v15 = vld [vmem:[#allocation0] sm:$0x1]  ;;  %v64_v16 = vld [vmem:[#allocation0 + $0x8] sm:$0x1] }
  0x89   :  { %62 = vst [vmem:[%s132_s1] sm:$0x1] %v59_v15  ;;  %76 = vst [vmem:[%s132_s1 + $0x1] sm:$0x1] %v64_v16 }

// kernel: mlp_forward.1
= control target key start
LH: loop header
LB: loop body
LE: loop exit
PB: predicated region body
PF: predicated region fallthrough
CT: control target
= control target key end

     0   :  { %v81_v13 = vlaneseq  ;;  %s444_s1 = inlined_call_operand.vmem [shape: f32[256,256], index: 1, kind: input, shape index: {}]   ;;  %s445_s0 = inlined_call_operand.vmem [shape: f32[1,256], index: 0, kind: input, shape index: {}]   ;;  %s446_s2 = inlined_call_operand.vmem [shape: f32[1,256], index: 2, kind: input, shape index: {}]   ;;  %s447_s3 = inlined_call_operand.vmem [shape: f32[1,256], index: 3, kind: output, shape index: {}]  }
   0x1   :  { %v46_v0 = vld [vmem:[%s444_s1 + $0xf8] sm:$0xff]  ;;  %v45_v1 = vld [vmem:[%s444_s1 + $0xf0] sm:$0xff]  ;;  %v44_v2 = vld [vmem:[%s444_s1 + $0xe8] sm:$0xff] }
   0x2   :  { %102 = vmatprep.subr.mxu0 %v46_v0  ;;  %v43_v3 = vld [vmem:[%s444_s1 + $0xe0] sm:$0xff]  ;;  %v42_v4 = vld [vmem:[%s444_s1 + $0xd8] sm:$0xff]  ;;  %v41_v5 = vld [vmem:[%s444_s1 + $0xd0] sm:$0xff]  ;;  %v280_v18 = vshrl.u32 %v81_v13, 7  ;;  %vm195_vm0 = vcmp.lt.s32.totalorder %v81_v13, 256 }
   0x3   :  { %103 = vmatpush1.msra.mxu0 %v45_v1  ;;  %v40_v6 = vld [vmem:[%s444_s1 + $0xc8] sm:$0xff]  ;;  %v39_v7 = vld [vmem:[%s444_s1 + $0xc0] sm:$0xff]  ;;  %v38_v8 = vld [vmem:[%s444_s1 + $0xb8] sm:$0xff] }
   0x4   :  { %104 = vmatprep.subr.mxu0 %v44_v2  ;;  %v37_v9 = vld [vmem:[%s444_s1 + $0xb0] sm:$0xff]  ;;  %v36_v10 = vld [vmem:[%s444_s1 + $0xa8] sm:$0xff]  ;;  %v35_v11 = vld [vmem:[%s444_s1 + $0xa0] sm:$0xff]  ;;  %v87_v23 = vsub.s32 1, %v280_v18  ;;  %v83_v1 = vsub.s32 0, %v280_v18 }
   0x5   :  { %105 = vmatpush1.msra.mxu0 %v43_v3  ;;  %v34_v12 = vld [vmem:[%s444_s1 + $0x98] sm:$0xff]  ;;  %v33_v14 = vld [vmem:[%s444_s1 + $0x90] sm:$0xff]  ;;  %v32_v15 = vld [vmem:[%s444_s1 + $0x88] sm:$0xff] }
   0x6   :  { %106 = vmatprep.subr.mxu0 %v42_v4  ;;  %v31_v16 = vld [vmem:[%s444_s1 + $0x80] sm:$0xff]  ;;  %v30_v17 = vld [vmem:[%s444_s1 + $0x78] sm:$0xff]  ;;  %v29_v19 = vld [vmem:[%s444_s1 + $0x70] sm:$0xff] }
   0x7   :  { %107 = vmatpush1.msra.mxu0 %v41_v5  ;;  %v28_v20 = vld [vmem:[%s444_s1 + $0x68] sm:$0xff]  ;;  %v27_v21 = vld [vmem:[%s444_s1 + $0x60] sm:$0xff]  ;;  %v26_v22 = vld [vmem:[%s444_s1 + $0x58] sm:$0xff] }
   0x8   :  { %108 = vmatprep.subr.mxu0 %v40_v6  ;;  %v25_v24 = vld [vmem:[%s444_s1 + $0x50] sm:$0xff]  ;;  %v24_v25 = vld [vmem:[%s444_s1 + $0x48] sm:$0xff]  ;;  %v23_v26 = vld [vmem:[%s444_s1 + $0x40] sm:$0xff] }
   0x9   :  { %109 = vmatpush1.msra.mxu0 %v39_v7  ;;  %v307_v27 = vld [vmem:[%s445_s0] sm:$0x3]  ;;  %v22_v28 = vld [vmem:[%s444_s1 + $0x38] sm:$0xff]  ;;  %v21_v30 = vld [vmem:[%s444_s1 + $0x30] sm:$0xff] }
   0xa   :  { %110 = vmatprep.subr.mxu0 %v38_v8  ;;  %v88_v29 = vrot.slane %v307_v27, %v87_v23  ;;  %v20_v31 = vld [vmem:[%s444_s1 + $0x28] sm:$0xff]  ;;  %v19_v32 = vld [vmem:[%s444_s1 + $0x20] sm:$0xff]  ;;  %v18_v33 = vld [vmem:[%s444_s1 + $0x18] sm:$0xff]  ;;  %v84_v6 = vrot.slane %v307_v27, %v83_v1 }
   0xb   :  { %111 = vmatpush1.msra.mxu0 %v37_v9  ;;  %v17_v34 = vld [vmem:[%s444_s1 + $0x10] sm:$0xff]  ;;  %v16_v35 = vld [vmem:[%s444_s1 + $0x8] sm:$0xff]  ;;  %v15_v36 = vld [vmem:[%s444_s1] sm:$0xff] }
   0xc   :  { %112 = vmatprep.subr.mxu0 %v36_v10  ;;  %166 = vmatprep.mubr.f32.mxu0 %v88_v29  ;;  %v78_v37 = vld [vmem:[%s444_s1 + $0x1f8] sm:$0xff]  ;;  %v77_v38 = vld [vmem:[%s444_s1 + $0x1f0] sm:$0xff]  ;;  %v76_v39 = vld [vmem:[%s444_s1 + $0x1e8] sm:$0xff] }
   0xd   :  { %113 = vmatpush1.msra.mxu0 %v35_v11  ;;  %v75_v40 = vld [vmem:[%s444_s1 + $0x1e0] sm:$0xff]  ;;  %v74_v41 = vld [vmem:[%s444_s1 + $0x1d8] sm:$0xff]  ;;  %v73_v42 = vld [vmem:[%s444_s1 + $0x1d0] sm:$0xff] }
   0xe   :  { %114 = vmatprep.subr.mxu0 %v34_v12  ;;  %v72_v43 = vld [vmem:[%s444_s1 + $0x1c8] sm:$0xff]  ;;  %v71_v44 = vld [vmem:[%s444_s1 + $0x1c0] sm:$0xff]  ;;  %v70_v45 = vld [vmem:[%s444_s1 + $0x1b8] sm:$0xff] }
   0xf   :  { %115 = vmatpush1.msra.mxu0 %v33_v14  ;;  %v69_v46 = vld [vmem:[%s444_s1 + $0x1b0] sm:$0xff]  ;;  %v68_v47 = vld [vmem:[%s444_s1 + $0x1a8] sm:$0xff]  ;;  %v67_v48 = vld [vmem:[%s444_s1 + $0x1a0] sm:$0xff] }
  0x10   :  { %116 = vmatprep.subr.mxu0 %v32_v15  ;;  %v66_v49 = vld [vmem:[%s444_s1 + $0x198] sm:$0xff]  ;;  %v65_v50 = vld [vmem:[%s444_s1 + $0x190] sm:$0xff]  ;;  %v64_v51 = vld [vmem:[%s444_s1 + $0x188] sm:$0xff]  ;;  %v207_v15 = vmov 1966171168  }
  0x11   :  { %117 = vmatpush1.msra.mxu0 %v31_v16  ;;  %v63_v52 = vld [vmem:[%s444_s1 + $0x180] sm:$0xff]  ;;  %v62_v53 = vld [vmem:[%s444_s1 + $0x178] sm:$0xff]  ;;  %v61_v54 = vld [vmem:[%s444_s1 + $0x170] sm:$0xff]  ;;  %v179_v16 = vunpack.c.l.s4 %v207_v15 }
  0x12   :  { %118 = vmatprep.subr.mxu0 %v30_v17  ;;  %v60_v55 = vld [vmem:[%s444_s1 + $0x168] sm:$0xff]  ;;  %v59_v56 = vld [vmem:[%s444_s1 + $0x160] sm:$0xff]  ;;  %v58_v57 = vld [vmem:[%s444_s1 + $0x158] sm:$0xff] }
  0x13   :  { %119 = vmatpush1.msra.mxu0 %v29_v19  ;;  %v57_v58 = vld [vmem:[%s444_s1 + $0x150] sm:$0xff]  ;;  %v56_v59 = vld [vmem:[%s444_s1 + $0x148] sm:$0xff]  ;;  %v55_v60 = vld [vmem:[%s444_s1 + $0x140] sm:$0xff]  ;;  %v180_v17 = vunpack.c.0.s8 %v179_v16 }
  0x14   :  { %120 = vmatprep.subr.mxu0 %v28_v20  ;;  %v54_v61 = vld [vmem:[%s444_s1 + $0x138] sm:$0xff]  ;;  %v53_v62 = vld [vmem:[%s444_s1 + $0x130] sm:$0xff]  ;;  %v52_v63 = vld [vmem:[%s444_s1 + $0x128] sm:$0xff] }
  0x15   :  { %121 = vmatpush1.msra.mxu0 %v27_v21  ;;  %v51_v0 = vld [vmem:[%s444_s1 + $0x120] sm:$0xff]  ;;  %v50_v2 = vld [vmem:[%s444_s1 + $0x118] sm:$0xff]  ;;  %v49_v3 = vld [vmem:[%s444_s1 + $0x110] sm:$0xff]  ;;  %v183_v20 = vsub.s32 %v180_v17, %v280_v18 }
  0x16   :  { %122 = vmatprep.subr.mxu0 %v26_v22  ;;  %v48_v4 = vld [vmem:[%s444_s1 + $0x108] sm:$0xff]  ;;  %v47_v5 = vld [vmem:[%s444_s1 + $0x100] sm:$0xff] }
  0x17   :  { %123 = vmatpush1.msra.mxu0 %v25_v24  ;;  %v79_v7 = vld [vmem:[%s446_s2] sm:$0x3] }
  0x18   :  { %124 = vmatprep.subr.mxu0 %v24_v25  ;;  %v95_v8 = vrot.slane %v79_v7, %v83_v1  ;;  %v99_v9 = vrot.slane %v79_v7, %v87_v23 }
  0x19   :  { %125 = vmatpush1.msra.mxu0 %v23_v26 }
  0x1a   :  { %126 = vmatprep.subr.mxu0 %v22_v28 }
  0x1b   :  { %127 = vmatpush1.msra.mxu0 %v21_v30 }
  0x1c   :  { %128 = vmatprep.subr.mxu0 %v20_v31 }
  0x1d   :  { %129 = vmatpush1.msra.mxu0 %v19_v32 }
  0x1e   :  { %130 = vmatprep.subr.mxu0 %v18_v33 }
  0x1f   :  { %131 = vmatpush1.msra.mxu0 %v17_v34 }
  0x20   :  { %132 = vmatprep.subr.mxu0 %v16_v35 }
  0x21   :  { %133 = vmatpush1.msra.mxu0 %v15_v36 }
  0x22   :  { %134 = vmatprep.subr.mxu0 %v78_v37 }
  0x23   :  { %135 = vmatpush2.msra.mxu0 %v77_v38 }
  0x24   :  { %136 = vmatprep.subr.mxu0 %v76_v39 }
  0x25   :  { %137 = vmatpush2.msra.mxu0 %v75_v40 }
  0x26   :  { %138 = vmatprep.subr.mxu0 %v74_v41 }
  0x27   :  { %139 = vmatpush2.msra.mxu0 %v73_v42 }
  0x28   :  { %140 = vmatprep.subr.mxu0 %v72_v43 }
  0x29   :  { %141 = vmatpush2.msra.mxu0 %v71_v44 }
  0x2a   :  { %142 = vmatprep.subr.mxu0 %v70_v45 }
  0x2b   :  { %143 = vmatpush2.msra.mxu0 %v69_v46 }
  0x2c   :  { %144 = vmatprep.subr.mxu0 %v68_v47 }
  0x2d   :  { %145 = vmatpush2.msra.mxu0 %v67_v48 }
  0x2e   :  { %146 = vmatprep.subr.mxu0 %v66_v49 }
  0x2f   :  { %147 = vmatpush2.msra.mxu0 %v65_v50 }
  0x30   :  { %148 = vmatprep.subr.mxu0 %v64_v51 }
  0x31   :  { %149 = vmatpush2.msra.mxu0 %v63_v52 }
  0x32   :  { %150 = vmatprep.subr.mxu0 %v62_v53 }
  0x33   :  { %151 = vmatpush2.msra.mxu0 %v61_v54 }
  0x34   :  { %152 = vmatprep.subr.mxu0 %v60_v55 }
  0x35   :  { %153 = vmatpush2.msra.mxu0 %v59_v56 }
  0x36   :  { %154 = vmatprep.subr.mxu0 %v58_v57 }
  0x37   :  { %155 = vmatpush2.msra.mxu0 %v57_v58 }
  0x38   :  { %156 = vmatprep.subr.mxu0 %v56_v59 }
  0x39   :  { %157 = vmatpush2.msra.mxu0 %v55_v60 }
  0x3a   :  { %158 = vmatprep.subr.mxu0 %v54_v61 }
  0x3b   :  { %159 = vmatpush2.msra.mxu0 %v53_v62 }
  0x3c   :  { %160 = vmatprep.subr.mxu0 %v52_v63 }
  0x3d   :  { %161 = vmatpush2.msra.mxu0 %v51_v0 }
  0x3e   :  { %162 = vmatprep.subr.mxu0 %v50_v2 }
  0x3f   :  { %163 = vmatpush2.msra.mxu0 %v49_v3 }
  0x40   :  { %164 = vmatprep.subr.mxu0 %v48_v4 }
  0x41   :  { %165 = vmatpush2.msra.mxu0 %v47_v5 }
  0x42   :  { %167 = vmatmul.mubr.f32.vlgmr.msra.gmra.mxu0 %v84_v6 }
 0x102   :  { %v168_v10 = vpop.f32.mrf.mxu0 }
 0x103   :  { %v169_v11 = vadd.f32 %v168_v10, %v95_v8 }
 0x104   :  { %v170_v12 = vpop.f32.mrf.mxu0 }
 0x105   :  { %v171_v14 = vadd.f32 %v170_v12, %v99_v9  ;;  %203 = vtanh.f32 %v169_v11 }
 0x107   :  { %205 = vtanh.f32 %v171_v14 }
 0x112   :  { %v204_v19 = vpop.eup %203 }
 0x114   :  { %v206_v21 = vpop.eup %205 }
 0x115   :  { %v177_v22 = vcombine.low %v204_v19, %v206_v21 }
 0x117   :  { %v184_v24 = vrot.slane %v177_v22, %v183_v20 }
 0x119   :  { %v191_v25 = vrot.slane %v184_v24, %v183_v20 }
 0x11b   :  { %197 = vst.msk [vmem:[%s447_s3] sm:$0x3] %vm195_vm0, %v191_v25 }

</bundles_post_ra>
